<compile_context>
chip_gen: v7x
topology: tpu7x:2x2x1
jax: 0.10.0
libtpu: 0.0.40
codegen_flags: <defaults>
</compile_context>

<pallas_src>
import math

import jax
import jax.numpy as jnp
from jax.experimental import pallas as pl
from jax.experimental.pallas import tpu as pltpu

_TAN_PI_8 = 0.4142135623730951
_PI_2 = math.pi / 2.0
_PI_4 = math.pi / 4.0

# Packed feature offsets (each feature occupies 8 sublane rows after the
# (16, padded_b) -> (128, padded_b//8) sublane-densifying reshape).
_TE, _TT, _RE, _TR = 0, 3, 6, 10  # transl_err, target_transl, rot_err, target_rot


def _recip(x):
  """EUP approximate reciprocal refined with one Newton-Raphson step."""
  r = pl.reciprocal(x, approx=True)
  return r * (2.0 - x * r)


def _atan2_nonneg(y, x):
  """atan2(y, x) for y >= 0, x >= 0.

  Mosaic has no native atan/atan2 lowering, so we use the Cephes
  single-precision atan polynomial (~3e-7 abs error). Divisions use the EUP
  approximate reciprocal (+1 NR step) so they stay off the VALU slot.
  """
  swap = y > x
  num = jnp.where(swap, x, y)
  den = jnp.where(swap, y, x)
  safe_den = jnp.where(den == 0.0, jnp.float32(1.0), den)
  r = num * _recip(safe_den)                           # ratio in [0, 1]
  big = r > _TAN_PI_8                                  # range reduction @ tan(pi/8)
  rr = jnp.where(big, (r - 1.0) * _recip(r + 1.0), r)
  z = rr * rr
  p = ((8.05374449538e-2 * z - 1.38776856032e-1) * z
       + 1.99777106478e-1) * z - 3.33329491539e-1
  a = p * z * rr + rr
  a = a + jnp.where(big, jnp.float32(_PI_4), jnp.float32(0.0))
  ang = jnp.where(swap, jnp.float32(_PI_2) - a, a)
  ang = jnp.where((y == 0.0) & (x == 0.0), jnp.float32(0.0), ang)
  return ang


def _geometric_loss_kernel(packed_ref, acc_ref):
  """Processes one (128, cols) tile of the packed feature-major batch.

  packed_ref: feature f lives in rows [8f, 8f+8) as an (8, cols) sublane-dense
              slab; features ordered [transl_err(3), target_transl(3),
              rot_err(4), target_rot(4), pad(2)].
  acc_ref   : (16, cols) resident partial sums; rows 0:8 = SmoothL1 sum,
              rows 8:16 = quaternion distance.  Reduced / normalized once in
              the wrapper.
  """

  @pl.when(pl.program_id(0) == 0)
  def _():
    acc_ref[...] = jnp.zeros_like(acc_ref)

  def slab(base, f):
    r0 = (base + f) * 8
    return packed_ref[r0:r0 + 8, :]                    # (8, cols) sublane-dense

  # ---- translation: SmoothL1 (beta=1) summed over the 3 components ----
  def smooth_l1(f):
    d = slab(_TE, f) - slab(_TT, f)
    ad = jnp.abs(d)
    return jnp.where(ad < 1.0, 0.5 * d * d, ad - 0.5)

  transl_part = smooth_l1(0) + smooth_l1(1) + smooth_l1(2)

  # ---- rotation: 2*atan2(||vec||, |w|) of quatmul(rot_err, quatinv(target_rot)) ----
  q0, q1, q2, q3 = slab(_RE, 0), slab(_RE, 1), slab(_RE, 2), slab(_RE, 3)
  r0 = slab(_TR, 0)
  r1 = -slab(_TR, 1)
  r2 = -slab(_TR, 2)
  r3 = -slab(_TR, 3)
  t0 = r0 * q0 - r1 * q1 - r2 * q2 - r3 * q3
  t1 = r0 * q1 + r1 * q0 - r2 * q3 + r3 * q2
  t2 = r0 * q2 + r1 * q3 + r2 * q0 - r3 * q1
  t3 = r0 * q3 - r1 * q2 + r2 * q1 + r3 * q0
  vec_norm = jnp.sqrt(t1 * t1 + t2 * t2 + t3 * t3)
  dist = 2.0 * _atan2_nonneg(vec_norm, jnp.abs(t0))    # (8, cols)

  # Full-vreg (unmasked) accumulator updates; zero-padded lanes add 0.
  acc_ref[0:8, :] += transl_part
  acc_ref[8:16, :] += dist


def _round_up(x, m):
  return ((x + m - 1) // m) * m


def _reference(tt, tr, te, re, sx, sq):
  """Pure-JAX reference mirroring the PyTorch forward (also small-batch path)."""
  diff = te - tt
  ad = jnp.abs(diff)
  sl1 = jnp.where(ad < 1.0, 0.5 * diff * diff, ad - 0.5)
  loss_transl = jnp.mean(jnp.sum(sl1, axis=1))
  q, r = re, tr
  r0, r1, r2, r3 = r[:, 0], -r[:, 1], -r[:, 2], -r[:, 3]
  q0, q1, q2, q3 = q[:, 0], q[:, 1], q[:, 2], q[:, 3]
  t0 = r0 * q0 - r1 * q1 - r2 * q2 - r3 * q3
  t1 = r0 * q1 + r1 * q0 - r2 * q3 + r3 * q2
  t2 = r0 * q2 + r1 * q3 + r2 * q0 - r3 * q1
  t3 = r0 * q3 - r1 * q2 + r2 * q1 + r3 * q0
  dist = 2.0 * jnp.arctan2(jnp.sqrt(t1 * t1 + t2 * t2 + t3 * t3), jnp.abs(t0))
  loss_rot = jnp.mean(dist)
  return (jnp.exp(-sx[0]) * loss_transl + sx[0]
          + jnp.exp(-sq[0]) * loss_rot + sq[0])


def geometric_loss(target_transl, target_rot, transl_err, rot_err, sx, sq,
                   *, b_tile=32768, min_pallas_batch=2048):
  """Pallas wrapper. Inputs (B,3),(B,4),(B,3),(B,4),(1,),(1,); returns scalar."""
  B = target_transl.shape[0]

  # Small-batch fast path: at module-typical B=O(10) the pallas_call launch +
  # pack/DMA overhead dominates by orders of magnitude; let XLA fuse it.
  if B < min_pallas_batch:
    return _reference(target_transl, target_rot, transl_err, rot_err, sx, sq)

  # Tile sizing: multiples of 1024 batch elements (=> cols multiples of 128).
  b_tile = _round_up(max(b_tile, 1024), 1024)
  b_tile = min(b_tile, _round_up(B, 1024))
  padded_b = b_tile * pl.cdiv(B, b_tile)
  cols = b_tile // 8
  total_cols = padded_b // 8
  n_tiles = total_cols // cols

  # One packed feature-major, sublane-dense buffer: single fused XLA prologue
  # pass and a single DMA per grid step.
  packed = jnp.concatenate(
      [transl_err.astype(jnp.float32), target_transl.astype(jnp.float32),
       rot_err.astype(jnp.float32), target_rot.astype(jnp.float32)],
      axis=1)                                               # (B, 14)
  packed = jnp.pad(packed, ((0, padded_b - B), (0, 2)))     # zero pad -> adds 0
  packed = jnp.transpose(packed).reshape(128, total_cols)   # sublane-dense

  partials = pl.pallas_call(
      _geometric_loss_kernel,
      out_shape=jax.ShapeDtypeStruct((16, cols), jnp.float32),
      grid_spec=pltpu.PrefetchScalarGridSpec(
          num_scalar_prefetch=0,
          grid=(n_tiles,),
          in_specs=[pl.BlockSpec((128, cols), lambda i: (0, i))],
          out_specs=pl.BlockSpec((16, cols), lambda i: (0, 0)),
      ),
      compiler_params=pltpu.CompilerParams(
          dimension_semantics=("arbitrary",)),
  )(packed)
  # TODO(synk): on v7x (2 TCs) add a leading CORE_PARALLEL grid axis with one
  # output block per core once profiling confirms both cores engage.

  # Single cross-lane reduce + mean over the *true* B + scalar combine, once.
  inv_b = jnp.float32(1.0 / B)
  loss_transl = jnp.sum(partials[0:8, :]) * inv_b
  loss_rot = jnp.sum(partials[8:16, :]) * inv_b
  sxs = sx[0].astype(jnp.float32)
  sqs = sq[0].astype(jnp.float32)
  return jnp.exp(-sxs) * loss_transl + sxs + jnp.exp(-sqs) * loss_rot + sqs


def _make_inputs(key, B):
  k1, k2, k3, k4 = jax.random.split(key, 4)
  target_transl = 2.0 * jax.random.normal(k1, (B, 3), dtype=jnp.float32)
  transl_err = 2.0 * jax.random.normal(k2, (B, 3), dtype=jnp.float32)
  target_rot = jax.random.normal(k3, (B, 4), dtype=jnp.float32)
  target_rot = target_rot / jnp.linalg.norm(target_rot, axis=1, keepdims=True)
  rot_err = jax.random.normal(k4, (B, 4), dtype=jnp.float32)
  rot_err = rot_err / jnp.linalg.norm(rot_err, axis=1, keepdims=True)
  return target_transl, target_rot, transl_err, rot_err


if __name__ == "__main__":
  # Module parameters, initialized exactly as in __init__ (sx=0.0, sq=-3.0).
  sx = jnp.array([0.0], dtype=jnp.float32)
  sq = jnp.array([-3.0], dtype=jnp.float32)

  key = jax.random.PRNGKey(0)
  k_small, k_big = jax.random.split(key)

  # Small module-typical batch: force the Pallas path so the kernel executes.
  args8 = _make_inputs(k_small, 8)
  out8 = jax.block_until_ready(
      geometric_loss(*args8, sx, sq, min_pallas_batch=0))
  ref8 = _reference(*args8, sx, sq)
  assert jnp.allclose(out8, ref8, rtol=1e-3, atol=1e-3), (out8, ref8)

  # Ragged multi-tile batch exercising the resident accumulator across tiles.
  args3000 = _make_inputs(k_big, 3000)
  out3000 = jax.block_until_ready(
      geometric_loss(*args3000, sx, sq, b_tile=1024, min_pallas_batch=0))
  ref3000 = _reference(*args3000, sx, sq)
  assert jnp.allclose(out3000, ref3000, rtol=1e-3, atol=1e-3), (out3000, ref3000)

  # Default small-batch fast path (pure fused XLA) still matches.
  out_fast = jax.block_until_ready(geometric_loss(*args8, sx, sq))
  assert jnp.allclose(out_fast, ref8, rtol=1e-5, atol=1e-5)

  print("KERNEL_OK")
</pallas_src>

<mosaic_0001>
module attributes {stable_mosaic.version = 11 : i64} {
  func.func @_geometric_loss_kernel(%arg0: i32, %arg1: memref<128x128xf32, #tpu.memory_space<vmem>>, %arg2: memref<16x128xf32, #tpu.memory_space<vmem>>) attributes {dimension_semantics = [#tpu.dimension_semantics<arbitrary>], iteration_bounds = array<i64: 1>, scalar_prefetch = 0 : i64, scratch_operands = 0 : i64, tpu.core_type = #tpu.core_type<tc>, window_params = [{transform_indices = @transform_0, window_bounds = array<i64: 128, 128>}, {pipeline_mode = #tpu.pipeline_mode<synchronous>, transform_indices = @transform_1, window_bounds = array<i64: 16, 128>}]} {
    %c0_i32 = arith.constant 0 : i32
    %0 = arith.cmpi eq, %arg0, %c0_i32 : i32
    %1 = arith.extui %0 : i1 to i32
    %c0_i32_0 = arith.constant 0 : i32
    %2 = arith.cmpi ne, %1, %c0_i32_0 : i32
    scf.if %2 {
      %cst_52 = arith.constant 0.000000e+00 : f32
      %152 = vector.broadcast %cst_52 : f32 to vector<16x128xf32>
      %c0_53 = arith.constant 0 : index
      %c0_54 = arith.constant 0 : index
      %153 = vector.load %arg2[%c0_53, %c0_54] : memref<16x128xf32, #tpu.memory_space<vmem>>, vector<16x128xf32>
      tpu.vector_store %arg2[%c0_53, %c0_54], %152 {strides = array<i32>} : memref<16x128xf32, #tpu.memory_space<vmem>>, vector<16x128xf32>,
    } else {
    }
    %c0 = arith.constant 0 : index
    %c0_1 = arith.constant 0 : index
    %3 = vector.load %arg1[%c0, %c0_1] : memref<128x128xf32, #tpu.memory_space<vmem>>, vector<8x128xf32>
    %c24 = arith.constant 24 : index
    %c0_2 = arith.constant 0 : index
    %4 = vector.load %arg1[%c24, %c0_2] : memref<128x128xf32, #tpu.memory_space<vmem>>, vector<8x128xf32>
    %5 = arith.subf %3, %4 : vector<8x128xf32>
    %6 = math.absf %5 : vector<8x128xf32>
    %cst = arith.constant 1.000000e+00 : f32
    %7 = vector.broadcast %cst : f32 to vector<8x128xf32>
    %8 = arith.cmpf olt, %6, %7 : vector<8x128xf32>
    %cst_3 = arith.constant 5.000000e-01 : f32
    %9 = vector.broadcast %cst_3 : f32 to vector<8x128xf32>
    %10 = arith.mulf %9, %5 : vector<8x128xf32>
    %11 = arith.mulf %10, %5 : vector<8x128xf32>
    %cst_4 = arith.constant 5.000000e-01 : f32
    %12 = vector.broadcast %cst_4 : f32 to vector<8x128xf32>
    %13 = arith.subf %6, %12 : vector<8x128xf32>
    %14 = arith.select %8, %11, %13 : vector<8x128xi1>, vector<8x128xf32>
    %c8 = arith.constant 8 : index
    %c0_5 = arith.constant 0 : index
    %15 = vector.load %arg1[%c8, %c0_5] : memref<128x128xf32, #tpu.memory_space<vmem>>, vector<8x128xf32>
    %c32 = arith.constant 32 : index
    %c0_6 = arith.constant 0 : index
    %16 = vector.load %arg1[%c32, %c0_6] : memref<128x128xf32, #tpu.memory_space<vmem>>, vector<8x128xf32>
    %17 = arith.subf %15, %16 : vector<8x128xf32>
    %18 = math.absf %17 : vector<8x128xf32>
    %cst_7 = arith.constant 1.000000e+00 : f32
    %19 = vector.broadcast %cst_7 : f32 to vector<8x128xf32>
    %20 = arith.cmpf olt, %18, %19 : vector<8x128xf32>
    %cst_8 = arith.constant 5.000000e-01 : f32
    %21 = vector.broadcast %cst_8 : f32 to vector<8x128xf32>
    %22 = arith.mulf %21, %17 : vector<8x128xf32>
    %23 = arith.mulf %22, %17 : vector<8x128xf32>
    %cst_9 = arith.constant 5.000000e-01 : f32
    %24 = vector.broadcast %cst_9 : f32 to vector<8x128xf32>
    %25 = arith.subf %18, %24 : vector<8x128xf32>
    %26 = arith.select %20, %23, %25 : vector<8x128xi1>, vector<8x128xf32>
    %27 = arith.addf %14, %26 : vector<8x128xf32>
    %c16 = arith.constant 16 : index
    %c0_10 = arith.constant 0 : index
    %28 = vector.load %arg1[%c16, %c0_10] : memref<128x128xf32, #tpu.memory_space<vmem>>, vector<8x128xf32>
    %c40 = arith.constant 40 : index
    %c0_11 = arith.constant 0 : index
    %29 = vector.load %arg1[%c40, %c0_11] : memref<128x128xf32, #tpu.memory_space<vmem>>, vector<8x128xf32>
    %30 = arith.subf %28, %29 : vector<8x128xf32>
    %31 = math.absf %30 : vector<8x128xf32>
    %cst_12 = arith.constant 1.000000e+00 : f32
    %32 = vector.broadcast %cst_12 : f32 to vector<8x128xf32>
    %33 = arith.cmpf olt, %31, %32 : vector<8x128xf32>
    %cst_13 = arith.constant 5.000000e-01 : f32
    %34 = vector.broadcast %cst_13 : f32 to vector<8x128xf32>
    %35 = arith.mulf %34, %30 : vector<8x128xf32>
    %36 = arith.mulf %35, %30 : vector<8x128xf32>
    %cst_14 = arith.constant 5.000000e-01 : f32
    %37 = vector.broadcast %cst_14 : f32 to vector<8x128xf32>
    %38 = arith.subf %31, %37 : vector<8x128xf32>
    %39 = arith.select %33, %36, %38 : vector<8x128xi1>, vector<8x128xf32>
    %40 = arith.addf %27, %39 : vector<8x128xf32>
    %c48 = arith.constant 48 : index
    %c0_15 = arith.constant 0 : index
    %41 = vector.load %arg1[%c48, %c0_15] : memref<128x128xf32, #tpu.memory_space<vmem>>, vector<8x128xf32>
    %c56 = arith.constant 56 : index
    %c0_16 = arith.constant 0 : index
    %42 = vector.load %arg1[%c56, %c0_16] : memref<128x128xf32, #tpu.memory_space<vmem>>, vector<8x128xf32>
    %c64 = arith.constant 64 : index
    %c0_17 = arith.constant 0 : index
    %43 = vector.load %arg1[%c64, %c0_17] : memref<128x128xf32, #tpu.memory_space<vmem>>, vector<8x128xf32>
    %c72 = arith.constant 72 : index
    %c0_18 = arith.constant 0 : index
    %44 = vector.load %arg1[%c72, %c0_18] : memref<128x128xf32, #tpu.memory_space<vmem>>, vector<8x128xf32>
    %c80 = arith.constant 80 : index
    %c0_19 = arith.constant 0 : index
    %45 = vector.load %arg1[%c80, %c0_19] : memref<128x128xf32, #tpu.memory_space<vmem>>, vector<8x128xf32>
    %c88 = arith.constant 88 : index
    %c0_20 = arith.constant 0 : index
    %46 = vector.load %arg1[%c88, %c0_20] : memref<128x128xf32, #tpu.memory_space<vmem>>, vector<8x128xf32>
    %cst_21 = arith.constant 0.000000e+00 : f32
    %47 = vector.broadcast %cst_21 : f32 to vector<8x128xf32>
    %48 = arith.subf %47, %46 : vector<8x128xf32>
    %c96 = arith.constant 96 : index
    %c0_22 = arith.constant 0 : index
    %49 = vector.load %arg1[%c96, %c0_22] : memref<128x128xf32, #tpu.memory_space<vmem>>, vector<8x128xf32>
    %cst_23 = arith.constant 0.000000e+00 : f32
    %50 = vector.broadcast %cst_23 : f32 to vector<8x128xf32>
    %51 = arith.subf %50, %49 : vector<8x128xf32>
    %c104 = arith.constant 104 : index
    %c0_24 = arith.constant 0 : index
    %52 = vector.load %arg1[%c104, %c0_24] : memref<128x128xf32, #tpu.memory_space<vmem>>, vector<8x128xf32>
    %cst_25 = arith.constant 0.000000e+00 : f32
    %53 = vector.broadcast %cst_25 : f32 to vector<8x128xf32>
    %54 = arith.subf %53, %52 : vector<8x128xf32>
    %55 = arith.mulf %45, %41 : vector<8x128xf32>
    %56 = arith.mulf %48, %42 : vector<8x128xf32>
    %57 = arith.subf %55, %56 : vector<8x128xf32>
    %58 = arith.mulf %51, %43 : vector<8x128xf32>
    %59 = arith.subf %57, %58 : vector<8x128xf32>
    %60 = arith.mulf %54, %44 : vector<8x128xf32>
    %61 = arith.subf %59, %60 : vector<8x128xf32>
    %62 = arith.mulf %45, %42 : vector<8x128xf32>
    %63 = arith.mulf %48, %41 : vector<8x128xf32>
    %64 = arith.addf %62, %63 : vector<8x128xf32>
    %65 = arith.mulf %51, %44 : vector<8x128xf32>
    %66 = arith.subf %64, %65 : vector<8x128xf32>
    %67 = arith.mulf %54, %43 : vector<8x128xf32>
    %68 = arith.addf %66, %67 : vector<8x128xf32>
    %69 = arith.mulf %45, %43 : vector<8x128xf32>
    %70 = arith.mulf %48, %44 : vector<8x128xf32>
    %71 = arith.addf %69, %70 : vector<8x128xf32>
    %72 = arith.mulf %51, %41 : vector<8x128xf32>
    %73 = arith.addf %71, %72 : vector<8x128xf32>
    %74 = arith.mulf %54, %42 : vector<8x128xf32>
    %75 = arith.subf %73, %74 : vector<8x128xf32>
    %76 = arith.mulf %45, %44 : vector<8x128xf32>
    %77 = arith.mulf %48, %43 : vector<8x128xf32>
    %78 = arith.subf %76, %77 : vector<8x128xf32>
    %79 = arith.mulf %51, %42 : vector<8x128xf32>
    %80 = arith.addf %78, %79 : vector<8x128xf32>
    %81 = arith.mulf %54, %41 : vector<8x128xf32>
    %82 = arith.addf %80, %81 : vector<8x128xf32>
    %83 = arith.mulf %68, %68 : vector<8x128xf32>
    %84 = arith.mulf %75, %75 : vector<8x128xf32>
    %85 = arith.addf %83, %84 : vector<8x128xf32>
    %86 = arith.mulf %82, %82 : vector<8x128xf32>
    %87 = arith.addf %85, %86 : vector<8x128xf32>
    %88 = math.sqrt %87 : vector<8x128xf32>
    %89 = math.absf %61 : vector<8x128xf32>
    %90 = arith.cmpf ogt, %88, %89 : vector<8x128xf32>
    %91 = arith.select %90, %89, %88 : vector<8x128xi1>, vector<8x128xf32>
    %92 = arith.select %90, %88, %89 : vector<8x128xi1>, vector<8x128xf32>
    %cst_26 = arith.constant 0.000000e+00 : f32
    %93 = vector.broadcast %cst_26 : f32 to vector<8x128xf32>
    %94 = arith.cmpf oeq, %92, %93 : vector<8x128xf32>
    %cst_27 = arith.constant 1.000000e+00 : f32
    %95 = vector.broadcast %cst_27 : f32 to vector<8x128xf32>
    %96 = arith.select %94, %95, %92 : vector<8x128xi1>, vector<8x128xf32>
    %97 = tpu.reciprocal %96 {approx = true} : vector<8x128xf32> -> vector<8x128xf32>
    %98 = arith.mulf %96, %97 : vector<8x128xf32>
    %cst_28 = arith.constant 2.000000e+00 : f32
    %99 = vector.broadcast %cst_28 : f32 to vector<8x128xf32>
    %100 = arith.subf %99, %98 : vector<8x128xf32>
    %101 = arith.mulf %97, %100 : vector<8x128xf32>
    %102 = arith.mulf %91, %101 : vector<8x128xf32>
    %cst_29 = arith.constant 0.414213568 : f32
    %103 = vector.broadcast %cst_29 : f32 to vector<8x128xf32>
    %104 = arith.cmpf ogt, %102, %103 : vector<8x128xf32>
    %cst_30 = arith.constant 1.000000e+00 : f32
    %105 = vector.broadcast %cst_30 : f32 to vector<8x128xf32>
    %106 = arith.subf %102, %105 : vector<8x128xf32>
    %cst_31 = arith.constant 1.000000e+00 : f32
    %107 = vector.broadcast %cst_31 : f32 to vector<8x128xf32>
    %108 = arith.addf %102, %107 : vector<8x128xf32>
    %109 = tpu.reciprocal %108 {approx = true} : vector<8x128xf32> -> vector<8x128xf32>
    %110 = arith.mulf %108, %109 : vector<8x128xf32>
    %cst_32 = arith.constant 2.000000e+00 : f32
    %111 = vector.broadcast %cst_32 : f32 to vector<8x128xf32>
    %112 = arith.subf %111, %110 : vector<8x128xf32>
    %113 = arith.mulf %109, %112 : vector<8x128xf32>
    %114 = arith.mulf %106, %113 : vector<8x128xf32>
    %115 = arith.select %104, %114, %102 : vector<8x128xi1>, vector<8x128xf32>
    %116 = arith.mulf %115, %115 : vector<8x128xf32>
    %cst_33 = arith.constant 0.0805374458 : f32
    %117 = vector.broadcast %cst_33 : f32 to vector<8x128xf32>
    %118 = arith.mulf %117, %116 : vector<8x128xf32>
    %cst_34 = arith.constant 0.138776854 : f32
    %119 = vector.broadcast %cst_34 : f32 to vector<8x128xf32>
    %120 = arith.subf %118, %119 : vector<8x128xf32>
    %121 = arith.mulf %120, %116 : vector<8x128xf32>
    %cst_35 = arith.constant 0.199777111 : f32
    %122 = vector.broadcast %cst_35 : f32 to vector<8x128xf32>
    %123 = arith.addf %121, %122 : vector<8x128xf32>
    %124 = arith.mulf %123, %116 : vector<8x128xf32>
    %cst_36 = arith.constant 0.333329499 : f32
    %125 = vector.broadcast %cst_36 : f32 to vector<8x128xf32>
    %126 = arith.subf %124, %125 : vector<8x128xf32>
    %127 = arith.mulf %126, %116 : vector<8x128xf32>
    %128 = arith.mulf %127, %115 : vector<8x128xf32>
    %129 = arith.addf %128, %115 : vector<8x128xf32>
    %cst_37 = arith.constant 0.785398185 : f32
    %cst_38 = arith.constant 0.000000e+00 : f32
    %130 = vector.broadcast %cst_37 : f32 to vector<8x128xf32>
    %131 = vector.broadcast %cst_38 : f32 to vector<8x128xf32>
    %132 = arith.select %104, %130, %131 : vector<8x128xi1>, vector<8x128xf32>
    %133 = arith.addf %129, %132 : vector<8x128xf32>
    %cst_39 = arith.constant 1.57079637 : f32
    %134 = vector.broadcast %cst_39 : f32 to vector<8x128xf32>
    %135 = arith.subf %134, %133 : vector<8x128xf32>
    %136 = arith.select %90, %135, %133 : vector<8x128xi1>, vector<8x128xf32>
    %cst_40 = arith.constant 0.000000e+00 : f32
    %137 = vector.broadcast %cst_40 : f32 to vector<8x128xf32>
    %138 = arith.cmpf oeq, %88, %137 : vector<8x128xf32>
    %cst_41 = arith.constant 0.000000e+00 : f32
    %139 = vector.broadcast %cst_41 : f32 to vector<8x128xf32>
    %140 = arith.cmpf oeq, %89, %139 : vector<8x128xf32>
    %141 = arith.andi %138, %140 : vector<8x128xi1>
    %cst_42 = arith.constant 0.000000e+00 : f32
    %142 = vector.broadcast %cst_42 : f32 to vector<8x128xf32>
    %143 = arith.select %141, %142, %136 : vector<8x128xi1>, vector<8x128xf32>
    %cst_43 = arith.constant 2.000000e+00 : f32
    %144 = vector.broadcast %cst_43 : f32 to vector<8x128xf32>
    %145 = arith.mulf %144, %143 : vector<8x128xf32>
    %c0_44 = arith.constant 0 : index
    %c0_45 = arith.constant 0 : index
    %146 = vector.load %arg2[%c0_44, %c0_45] : memref<16x128xf32, #tpu.memory_space<vmem>>, vector<8x128xf32>
    %147 = arith.addf %146, %40 : vector<8x128xf32>
    %c0_46 = arith.constant 0 : index
    %c0_47 = arith.constant 0 : index
    %148 = vector.load %arg2[%c0_46, %c0_47] : memref<16x128xf32, #tpu.memory_space<vmem>>, vector<8x128xf32>
    tpu.vector_store %arg2[%c0_46, %c0_47], %147 {strides = array<i32>} : memref<16x128xf32, #tpu.memory_space<vmem>>, vector<8x128xf32>,
    %c8_48 = arith.constant 8 : index
    %c0_49 = arith.constant 0 : index
    %149 = vector.load %arg2[%c8_48, %c0_49] : memref<16x128xf32, #tpu.memory_space<vmem>>, vector<8x128xf32>
    %150 = arith.addf %149, %145 : vector<8x128xf32>
    %c8_50 = arith.constant 8 : index
    %c0_51 = arith.constant 0 : index
    %151 = vector.load %arg2[%c8_50, %c0_51] : memref<16x128xf32, #tpu.memory_space<vmem>>, vector<8x128xf32>
    tpu.vector_store %arg2[%c8_50, %c0_51], %150 {strides = array<i32>} : memref<16x128xf32, #tpu.memory_space<vmem>>, vector<8x128xf32>,
    return
  }
  func.func @transform_0(%arg0: i32) -> (i32, i32) {
    %c0_i32 = arith.constant 0 : i32
    %c0_i32_0 = arith.constant 0 : i32
    return %c0_i32, %arg0 : i32, i32
  }
  func.func @transform_1(%arg0: i32) -> (i32, i32) {
    %c0_i32 = arith.constant 0 : i32
    %c0_i32_0 = arith.constant 0 : i32
    %c0_i32_1 = arith.constant 0 : i32
    return %c0_i32, %c0_i32_0 : i32, i32
  }
}

</mosaic_0001>

<bundles_post_ra>
// kernel: tpu_custom_call.1
= control target key start
LH: loop header
LB: loop body
LE: loop exit
PB: predicated region body
PF: predicated region fallthrough
CT: control target
= control target key end

     0   :  { %6 = vsyncpa [#allocation3], 0  ;;  %s308_s0 = inlined_call_operand.hbm [shape: f32[128,128], index: 0, kind: input, shape index: {}]   ;;  %s309_s1 = inlined_call_operand.hbm [shape: f32[16,128], index: 1, kind: output, shape index: {}]  }
   0x1   :  { %7 = vsyncpa [#allocation4], 0  ;;  %s236_s6 = smov [#allocation2]   ;;  %s188_s10 = scalar_lea.hbm %s308_s0, 2048 }
   0x2   :  { %s13_s7 = sshll.u32 %s236_s6, 4  ;;  %p189_p0 = scmp.ne.s32.totalorder %s308_s0, %s188_s10  ;;  %s14_s7 = int_to_ptr.vmem [resolvable:$true] %s13_s7 }
   0x3   :  { %p192_p1 = scmp.lt.u32.totalorder %s188_s10, %s308_s0 }
   0x5   :  { %p194_p2 = pnand %p192_p1, %p189_p0 }
   0x7   :  { %197 = shalt.err (!%p194_p2)
}
   0x8   :  { %s198_s15 = scalar_lea.vmem %s14_s7, 2048  ;;  %p203_p4 = scmp.lt.s32.totalorder %s14_s7, %s14_s7 }
   0x9   :  { %p199_p3 = scmp.ne.s32.totalorder %s14_s7, %s198_s15  ;;  %p204_p5 = scmp.lt.s32.totalorder %s198_s15, %s198_s15 }
   0xb   :  { %p205_p6 = por %p204_p5, %p203_p4 }
   0xd   :  { %p206_p7 = pnand %p205_p6, %p199_p3 }
   0xf   :  { %209 = shalt.err (!%p206_p7)
}
  0x10   :  { %s237_s16 = smov 128   ;;  %s238_s17 = smov 8  }
  0x11   :  { %19 = dma.hbm_to_vmem [thread:$0]  %s308_s0, 2048, %s14_s7, [#allocation3], %s237_s16, %s237_s16, %s238_s17  }
  0x12   :  { %232 = dma.done.wait [#allocation3], 2048  }
  0x13   :  { %233 = vsyncadd [#allocation3], 4294965248  ;;  %v58_v0 = vld [vmem:[#allocation2 + $0x30] sm:$0xff]  ;;  %v59_v1 = vld [vmem:[#allocation2 + $0x38] sm:$0xff]  ;;  %s240_s0 = smov [#allocation5]  }
  0x14   :  { %v266_v2 = vld [vmem:[#allocation2 + $0x40] sm:$0xff]  ;;  %v268_v3 = vld [vmem:[#allocation2 + $0x48] sm:$0xff]  ;;  %v62_v4 = vld [vmem:[#allocation2 + $0x50] sm:$0xff]  ;;  %s159_s20 = sshll.u32 %s240_s0, 4  ;;  %s160_s20 = int_to_ptr.vmem [resolvable:$true] %s159_s20 }
  0x15   :  { %v63_v5 = vld [vmem:[#allocation2 + $0x58] sm:$0xff]  ;;  %v65_v7 = vld [vmem:[#allocation2 + $0x60] sm:$0xff]  ;;  %v67_v8 = vld [vmem:[#allocation2 + $0x68] sm:$0xff]  ;;  %v76_v9 = vmul.f32 %v62_v4, %v59_v1  ;;  %v83_v10 = vmul.f32 %v62_v4, %v266_v2  ;;  %v90_v13 = vmul.f32 %v62_v4, %v268_v3  ;;  %v69_v35 = vmul.f32 %v62_v4, %v58_v0  ;;  %s210_s21 = scalar_lea.vmem %s160_s20, 256  ;;  %p215_p9 = scmp.lt.s32.totalorder %s160_s20, %s160_s20 }
  0x16   :  { %v64_v6 = vsub.f32 0.0, %v63_v5  ;;  %v66_v11 = vsub.f32 0.0, %v65_v7  ;;  %v68_v12 = vsub.f32 0.0, %v67_v8  ;;  %v29_v18 = vld [vmem:[#allocation2] sm:$0xff]  ;;  %v30_v19 = vld [vmem:[#allocation2 + $0x18] sm:$0xff]  ;;  %v38_v24 = vld [vmem:[#allocation2 + $0x8] sm:$0xff]  ;;  %p211_p8 = scmp.ne.s32.totalorder %s160_s20, %s210_s21  ;;  %p216_p10 = scmp.lt.s32.totalorder %s210_s21, %s210_s21 }
  0x17   :  { %v39_v25 = vld [vmem:[#allocation2 + $0x20] sm:$0xff]  ;;  %v48_v30 = vld [vmem:[#allocation2 + $0x10] sm:$0xff]  ;;  %v49_v31 = vld [vmem:[#allocation2 + $0x28] sm:$0xff]  ;;  %v31_v34 = vsub.f32 %v29_v18, %v30_v19 }
  0x18   :  { %v77_v14 = vmul.f32 %v64_v6, %v58_v0  ;;  %v84_v15 = vmul.f32 %v64_v6, %v268_v3  ;;  %v91_v16 = vmul.f32 %v64_v6, %v266_v2  ;;  %v79_v17 = vmul.f32 %v66_v11, %v268_v3  ;;  %p217_p11 = por %p216_p10, %p215_p9 }
  0x19   :  { %v81_v21 = vmul.f32 %v68_v12, %v266_v2  ;;  %v86_v23 = vmul.f32 %v66_v11, %v58_v0  ;;  %v88_v26 = vmul.f32 %v68_v12, %v59_v1  ;;  %v93_v28 = vmul.f32 %v66_v11, %v59_v1 }
  0x1a   :  { %v78_v20 = vadd.f32 %v77_v14, %v76_v9  ;;  %v85_v22 = vadd.f32 %v84_v15, %v83_v10  ;;  %v92_v27 = vsub.f32 %v90_v13, %v91_v16  ;;  %v95_v29 = vmul.f32 %v68_v12, %v58_v0  ;;  %p218_p12 = pnand %p217_p11, %p211_p8 }
  0x1b   :  { %v40_v37 = vsub.f32 %v38_v24, %v39_v25  ;;  %v32_v40 = vand.u32 2147483647, %v31_v34  ;;  %v50_v41 = vsub.f32 %v48_v30, %v49_v31  ;;  %v34_v43 = vmul.f32 0.5, %v31_v34 }
  0x1c   :  { %v80_v32 = vsub.f32 %v78_v20, %v79_v17  ;;  %v87_v33 = vadd.f32 %v86_v23, %v85_v22  ;;  %v94_v36 = vadd.f32 %v93_v28, %v92_v27  ;;  %v70_v46 = vmul.f32 %v64_v6, %v59_v1 }
  0x1d   :  { %v41_v44 = vand.u32 2147483647, %v40_v37  ;;  %v43_v45 = vmul.f32 0.5, %v40_v37  ;;  %vm276_vm0 = vcmp.lt.f32.partialorder %v32_v40, 1.0  ;;  %v35_v51 = vmul.f32 %v34_v43, %v31_v34 }
  0x1e   :  { %v82_v38 = vadd.f32 %v81_v21, %v80_v32  ;;  %v89_v39 = vsub.f32 %v87_v33, %v88_v26  ;;  %v96_v42 = vadd.f32 %v95_v29, %v94_v36  ;;  %v171_v52 = vadd.f32 -0.5, %v32_v40 }
  0x1f   :  { %vm42_vm1 = vcmp.lt.f32.partialorder %v41_v44, 1.0  ;;  %v44_v54 = vmul.f32 %v43_v45, %v40_v37  ;;  %v172_v55 = vadd.f32 -0.5, %v41_v44  ;;  %v51_v56 = vand.u32 2147483647, %v50_v41 }
  0x20   :  { %v97_v47 = vmul.f32 %v82_v38, %v82_v38  ;;  %v98_v48 = vmul.f32 %v89_v39, %v89_v39  ;;  %v100_v50 = vmul.f32 %v96_v42, %v96_v42  ;;  %v37_v57 = vsel %vm276_vm0, %v35_v51, %v171_v52 }
  0x21   :  { %v53_v58 = vmul.f32 0.5, %v50_v41  ;;  %v46_v60 = vsel %vm42_vm1, %v44_v54, %v172_v55  ;;  %vm52_vm2 = vcmp.lt.f32.partialorder %v51_v56, 1.0  ;;  %v173_v61 = vadd.f32 -0.5, %v51_v56 }
  0x22   :  { %v99_v53 = vadd.f32 %v98_v48, %v97_v47  ;;  %v71_v62 = vsub.f32 %v69_v35, %v70_v46  ;;  %v72_v63 = vmul.f32 %v66_v11, %v266_v2  ;;  %v47_v0 = vadd.f32 %v46_v60, %v37_v57 }
  0x23   :  { %v54_v1 = vmul.f32 %v53_v58, %v50_v41  ;;  %v74_v7 = vmul.f32 %v68_v12, %v268_v3  ;;  %v239_v39 = vmov 0.0  }
  0x24   :  { %v101_v59 = vadd.f32 %v100_v50, %v99_v53  ;;  %v73_v6 = vsub.f32 %v71_v62, %v72_v63 }
  0x25   :  { %v56_v4 = vsel %vm52_vm2, %v54_v1, %v173_v61 }
  0x26   :  { %182 = vrsqrt.f32 %v101_v59  ;;  %v57_v5 = vadd.f32 %v56_v4, %v47_v0  ;;  %v75_v8 = vsub.f32 %v73_v6, %v74_v7  ;;  %vm104_vm3 = vcmp.eq.f32.partialorder %v101_v59, inf }
  0x27   :  { %v107_v10 = vand.u32 2147483648, %v101_v59  ;;  %vm106_vm4 = vcmp.eq.f32.partialorder %v101_v59, 0.0 }
  0x28   :  { %150 = vst [vmem:[#allocation5] sm:$0xff] %v57_v5  ;;  %v109_v14 = vand.u32 2147483647, %v75_v8 }
  0x2a   :  { %vm144_vm5 = vcmp.eq.f32.partialorder %v109_v14, 0.0 }
  0x30   :  { %v183_v9 = vpop.eup %182 }
  0x31   :  { %v103_v13 = vmul.f32 %v183_v9, %v101_v59 }
  0x33   :  { %v105_v15 = vsel %vm104_vm3, %v101_v59, %v103_v13 }
  0x34   :  { %v108_v16 = vsel %vm106_vm4, %v107_v10, %v105_v15 }
  0x35   :  { %vm110_vm6 = vcmp.gt.f32.partialorder %v108_v16, %v109_v14  ;;  %vm143_vm7 = vcmp.eq.f32.partialorder %v108_v16, 0.0 }
  0x36   :  { %v112_v2 = vsel %vm110_vm6, %v108_v16, %v109_v14  ;;  %vm285_vm8 = vmand %vm143_vm7, %vm144_vm5  ;;  %v111_v19 = vsel %vm110_vm6, %v109_v14, %v108_v16 }
  0x37   :  { %vm113_vm9 = vcmp.eq.f32.partialorder %v112_v2, 0.0 }
  0x38   :  { %v114_v3 = vsel %vm113_vm9, 1.0, %v112_v2 }
  0x39   :  { %184 = vrcp.f32 %v114_v3 }
  0x43   :  { %v185_v12 = vpop.eup %184 }
  0x44   :  { %v116_v17 = vmul.f32 %v185_v12, %v114_v3 }
  0x46   :  { %v117_v18 = vsub.f32 2.0, %v116_v17 }
  0x48   :  { %v118_v20 = vmul.f32 %v185_v12, %v117_v18 }
  0x4a   :  { %v119_v21 = vmul.f32 %v118_v20, %v111_v19 }
  0x4c   :  { %v122_v22 = vadd.f32 1.0, %v119_v21  ;;  %v174_v25 = vadd.f32 -1.0, %v119_v21  ;;  %vm120_vm10 = vcmp.gt.f32.partialorder %v119_v21, 0.41421357 }
  0x4d   :  { %v139_v40 = vsel %vm120_vm10, 0.7853982, %v239_v39 }
  0x4e   :  { %186 = vrcp.f32 %v122_v22 }
  0x58   :  { %v187_v23 = vpop.eup %186 }
  0x59   :  { %v124_v24 = vmul.f32 %v187_v23, %v122_v22 }
  0x5b   :  { %v125_v26 = vsub.f32 2.0, %v124_v24 }
  0x5d   :  { %v126_v27 = vmul.f32 %v187_v23, %v125_v26 }
  0x5f   :  { %v127_v28 = vmul.f32 %v174_v25, %v126_v27 }
  0x61   :  { %v128_v29 = vsel %vm120_vm10, %v127_v28, %v119_v21 }
  0x62   :  { %v129_v30 = vmul.f32 %v128_v29, %v128_v29 }
  0x64   :  { %v130_v31 = vmul.f32 0.080537446, %v129_v30 }
  0x66   :  { %v175_v32 = vadd.f32 -0.13877685, %v130_v31 }
  0x68   :  { %v132_v33 = vmul.f32 %v175_v32, %v129_v30 }
  0x6a   :  { %v133_v34 = vadd.f32 0.19977711, %v132_v33 }
  0x6c   :  { %v134_v35 = vmul.f32 %v133_v34, %v129_v30 }
  0x6e   :  { %v176_v36 = vadd.f32 -0.3333295, %v134_v35 }
  0x70   :  { %v136_v37 = vmul.f32 %v176_v36, %v129_v30 }
  0x72   :  { %v137_v38 = vmul.f32 %v136_v37, %v128_v29 }
  0x74   :  { %v138_v41 = vadd.f32 %v137_v38, %v128_v29 }
  0x76   :  { %v140_v42 = vadd.f32 %v139_v40, %v138_v41 }
  0x78   :  { %v141_v43 = vsub.f32 1.5707964, %v140_v42 }
  0x7a   :  { %v142_v44 = vsel %vm110_vm6, %v141_v43, %v140_v42 }
  0x7b   :  { %v146_v45 = vsel %vm285_vm8, 0.0, %v142_v44 }
  0x7c   :  { %v147_v46 = vmul.f32 2.0, %v146_v45 }
  0x7e   :  { %153 = vst [vmem:[#allocation5 + $0x8] sm:$0xff] %v147_v46 }
  0x7f   :  { %221 = shalt.err (!%p218_p12)
}
  0x80   :  { %s222_s24 = scalar_lea.hbm %s309_s1, 256 }
  0x81   :  { %p223_p13 = scmp.ne.s32.totalorder %s309_s1, %s222_s24  ;;  %p226_p0 = scmp.lt.u32.totalorder %s222_s24, %s309_s1 }
  0x83   :  { %p228_p1 = pnand %p226_p0, %p223_p13 }
  0x85   :  { %231 = shalt.err (!%p228_p1)
}
  0x86   :  { %165 = dma.vmem_to_hbm [thread:$0]  %s160_s20, 256, %s309_s1, [#allocation4], %s237_s16, %s237_s16, %s238_s17  }
  0x87   :  { %234 = dma.done.wait [#allocation4], 256  }
  0x88   :  { %235 = vsyncadd [#allocation4], 4294967040 }
  0x89   :  { %169 = vsyncpa [#allocation3], 1 }
  0x8a   :  { %170 = vsyncpa [#allocation4], 1 }

</bundles_post_ra>
